<compile_context>
chip_gen: v5e
topology: v5e:2x2
jax: 0.10.0
libtpu: 0.0.40
codegen_flags: <defaults>
</compile_context>

<pallas_src>
import math

import jax
import jax.numpy as jnp
from jax import lax
from jax.experimental import pallas as pl
from jax.experimental.pallas import tpu as pltpu


# ---------------------------------------------------------------------------
# generation-aware VMEM budgets
# ---------------------------------------------------------------------------
_VMEM_CAP_CACHE = []


def _vmem_budgets():
    """(per-x-block budget, scoped vmem limit) tuned per TPU generation."""
    if not _VMEM_CAP_CACHE:
        try:
            cap = int(pltpu.get_tpu_info().vmem_capacity_bytes)
        except Exception:  # interpret mode / older jax: assume a 128 MiB part
            cap = 128 * 1024 * 1024
        _VMEM_CAP_CACHE.append(cap)
    cap = _VMEM_CAP_CACHE[0]
    # Scoped limit: 64 MiB on 128 MiB parts (v5e/v6e), 32 MiB on 64 MiB v7x.
    vmem_limit = int(min(64 * 1024 * 1024, cap // 2))
    # Per-x-block budget: 8 MiB (v5e/v6e) / 4 MiB (v7x).  Each grid step holds
    # roughly 4x the x block (double-buffered in + out) plus tiny mask / per-
    # channel buffers, so this stays comfortably under the scoped limit.
    block_budget = int(min(8 * 1024 * 1024, cap // 16))
    return block_budget, vmem_limit


def _pick_tiles(C, HW, itemsize, block_budget_bytes, min_c_tiles=1):
    """Pick (tile_c, tile_hw) for x viewed as (B, C, HW)."""
    # Sublane-packing multiple: 8 for f32, 16 for bf16, 32 for int8/fp8.
    sub = max(8, 32 // max(int(itemsize), 1))
    # Prefer contiguous whole-row DMAs: keep tile_hw == HW and size channels.
    tile_hw = HW
    if C % sub != 0:
        # Full-dim blocks are exempt from the (8,128) divisibility rule.
        tile_c = C
    else:
        # Grow tile_c (multiple of `sub`) until the x block fills the budget.
        max_rows = (block_budget_bytes // max(tile_hw * itemsize, 1)) // sub * sub
        tile_c = int(min(C, max(sub, max_rows)))
        if min_c_tiles > 1 and C >= min_c_tiles * sub:
            # Guarantee >= min_c_tiles channel tiles (megacore coverage on v7x).
            tile_c = min(tile_c, max(sub, (C // min_c_tiles) // sub * sub))
    # Only split HW (exact powers of two, staying a multiple of 128 ->
    # lane-dense unmasked stores) if even the minimal channel tile overflows.
    while tile_c * tile_hw * itemsize > block_budget_bytes and tile_hw % 256 == 0:
        tile_hw //= 2
    return tile_c, tile_hw


# ---------------------------------------------------------------------------
# kernels
# ---------------------------------------------------------------------------
def _bn_apply_kernel(x_ref, m_ref, s_ref, t_ref, o_ref):
    # x_ref: (tc, thw)  m_ref: (1, thw)  s_ref/t_ref: (tc, 1)  o_ref: (tc, thw)
    x = x_ref[...].astype(jnp.float32)
    m = m_ref[...].astype(jnp.float32)          # cast in-kernel (native dtype in HBM)
    y = (x * s_ref[...] + t_ref[...]) * m
    o_ref[...] = y.astype(o_ref.dtype)


def _bn_stats_kernel(x_ref, m_ref, c_ref, su_ref, sum2_ref, su2m2_ref):
    # grid = (C tiles [parallel], B [reduce], HW tiles [reduce]).
    # x_ref: (tc, thw)  m_ref: (1, thw)  c_ref: (tc, 1) centering values.
    # Outputs: lane-dense (tc, 128) per-channel partial sums of
    #   u = x - center,  u*m^2,  u^2*m^2    (final cross-lane reduce in JAX).
    @pl.when(jnp.logical_and(pl.program_id(1) == 0, pl.program_id(2) == 0))
    def _init():
        su_ref[...] = jnp.zeros_like(su_ref)
        sum2_ref[...] = jnp.zeros_like(sum2_ref)
        su2m2_ref[...] = jnp.zeros_like(su2m2_ref)

    center = c_ref[...].astype(jnp.float32)     # (tc, 1), hoisted out of the loop
    thw = x_ref.shape[-1]

    if thw % 128 == 0:
        # Pure VPU element-wise accumulation over 128-lane chunks: no per-step
        # cross-lane (XLU) reductions, full-width unmasked accumulator stores.
        n_chunks = thw // 128

        def body(j, carry):
            off = pl.multiple_of(j * 128, 128)
            x = x_ref[:, pl.ds(off, 128)].astype(jnp.float32)
            m = m_ref[:, pl.ds(off, 128)].astype(jnp.float32)
            u = x - center
            m2 = m * m
            um2 = u * m2
            su_ref[...] += u
            sum2_ref[...] += um2
            su2m2_ref[...] += u * um2
            return carry

        lax.fori_loop(0, n_chunks, body, 0, unroll=min(n_chunks, 8))
    else:
        # HW not lane-aligned: fall back to cross-lane sums into lane 0.
        x = x_ref[...].astype(jnp.float32)
        m = m_ref[...].astype(jnp.float32)
        u = x - center
        m2 = m * m
        um2 = u * m2
        su_ref[:, 0:1] += jnp.sum(u, axis=-1, keepdims=True)
        sum2_ref[:, 0:1] += jnp.sum(um2, axis=-1, keepdims=True)
        su2m2_ref[:, 0:1] += jnp.sum(u * um2, axis=-1, keepdims=True)


# ---------------------------------------------------------------------------
# wrappers
# ---------------------------------------------------------------------------
def _as_float_mask(mask):
    # Keep floating masks in their native dtype (cast happens inside kernels);
    # only integer/bool masks are promoted here.
    if jnp.issubdtype(mask.dtype, jnp.floating):
        return mask
    return mask.astype(jnp.float32)


def _bn_apply(x, mask, scale, shift):
    """y[b,c,h,w] = (x[b,c,h,w] * scale[c] + shift[c]) * mask[b,0,h,w]."""
    B, C, H, W = x.shape
    HW = H * W
    x3 = x.reshape(B, C, HW)
    m3 = _as_float_mask(mask).reshape(B, 1, HW)
    s2 = scale.reshape(C, 1).astype(jnp.float32)
    t2 = shift.reshape(C, 1).astype(jnp.float32)

    block_budget, vmem_limit = _vmem_budgets()
    tile_c, tile_hw = _pick_tiles(C, HW, x.dtype.itemsize, block_budget)
    # If HW (or the final tile) is not a multiple of 128, Pallas pads the last
    # block and output stores become masked — still correct, just slower.
    grid = (B, pl.cdiv(C, tile_c), pl.cdiv(HW, tile_hw))

    out = pl.pallas_call(
        _bn_apply_kernel,
        out_shape=jax.ShapeDtypeStruct((B, C, HW), x.dtype),
        grid=grid,
        in_specs=[
            pl.BlockSpec((None, tile_c, tile_hw), lambda b, c, s: (b, c, s)),
            pl.BlockSpec((None, 1, tile_hw), lambda b, c, s: (b, 0, s)),
            pl.BlockSpec((tile_c, 1), lambda b, c, s: (c, 0)),
            pl.BlockSpec((tile_c, 1), lambda b, c, s: (c, 0)),
        ],
        out_specs=pl.BlockSpec((None, tile_c, tile_hw), lambda b, c, s: (b, c, s)),
        compiler_params=pltpu.CompilerParams(
            dimension_semantics=("parallel", "parallel", "parallel"),
            vmem_limit_bytes=vmem_limit,
        ),
    )(x3, m3, s2, t2)
    return out.reshape(B, C, H, W)


def _bn_batch_stats(x, mask, center):
    """Lane-dense (C, 128) partial sums of (x-center), (x-center)*m^2, (x-center)^2*m^2."""
    B, C, H, W = x.shape
    HW = H * W
    x3 = x.reshape(B, C, HW)
    m3 = _as_float_mask(mask).reshape(B, 1, HW)
    c2 = center.reshape(C, 1).astype(jnp.float32)

    block_budget, vmem_limit = _vmem_budgets()
    # min_c_tiles=2: split C across >= 2 tiles when possible so the 'parallel'
    # channel axis covers both TensorCores on v7x (harmless on 1-TC parts).
    tile_c, tile_hw = _pick_tiles(C, HW, x.dtype.itemsize, block_budget, min_c_tiles=2)
    # A padded spatial block would pollute the reduction; _pick_tiles only
    # shrinks HW by exact powers of two, so tile_hw always divides HW.
    assert HW % tile_hw == 0
    grid = (pl.cdiv(C, tile_c), B, HW // tile_hw)

    out_spec = pl.BlockSpec((tile_c, 128), lambda c, b, s: (c, 0))
    out_sds = jax.ShapeDtypeStruct((C, 128), jnp.float32)
    s_u, s_um2, s_u2m2 = pl.pallas_call(
        _bn_stats_kernel,
        out_shape=(out_sds, out_sds, out_sds),
        grid=grid,
        in_specs=[
            pl.BlockSpec((None, tile_c, tile_hw), lambda c, b, s: (b, c, s)),
            pl.BlockSpec((None, 1, tile_hw), lambda c, b, s: (b, 0, s)),
            pl.BlockSpec((tile_c, 1), lambda c, b, s: (c, 0)),
        ],
        out_specs=(out_spec, out_spec, out_spec),
        compiler_params=pltpu.CompilerParams(
            dimension_semantics=("parallel", "arbitrary", "arbitrary"),
            vmem_limit_bytes=vmem_limit,
        ),
    )(x3, m3, c2)
    return s_u, s_um2, s_u2m2


# ---------------------------------------------------------------------------
# BatchNorm2d forward (functional; running stats returned, not mutated)
# ---------------------------------------------------------------------------
# TODO(synk): PyTorch mutates running_mean/running_var buffers in place; here the
# updated stats are returned functionally (no in-place buffer semantics in JAX).
def batchnorm2d_forward(x, mask, running_mean, running_var, beta, gamma=None, *,
                        eps=1e-5, momentum=0.01, training=False, mode="renorm",
                        rmax=1.0, dmax=0.0, momentum_basic_batchsize=None):
    assert mode in ("norm", "renorm", "fixup")
    # PyTorch clamps the *base* momentum in __init__ and applies the
    # sqrt(batch/basic) rescale without re-clamping; matched exactly here.
    momentum = min(max(momentum, 0.0), 1.0)

    if training and mode != "fixup":
        B, C, H, W = x.shape
        n_elems = float(B * H * W)                       # per-channel element count
        mf = _as_float_mask(mask).astype(jnp.float32)
        mask_sum = jnp.sum(mf)
        mask_sq_sum = jnp.sum(mf * mf)

        # Sums centered on running_mean (well-conditioned single-pass variance).
        s_u, s_um2, s_u2m2 = _bn_batch_stats(x, mask, running_mean)
        s_u = jnp.sum(s_u, axis=-1)
        s_um2 = jnp.sum(s_um2, axis=-1)
        s_u2m2 = jnp.sum(s_u2m2, axis=-1)

        rm = running_mean.astype(jnp.float32)
        batch_mean = (s_u + n_elems * rm) / mask_sum     # == sum(x) / mask_sum
        delta = batch_mean - rm
        # sum(((x - batch_mean) * mask)^2) expanded around running_mean.
        batch_var = (s_u2m2 - 2.0 * delta * s_um2
                     + delta * delta * mask_sq_sum) / mask_sum
        std = jnp.sqrt(batch_var + eps)
        if mode == "renorm":
            running_std = jnp.sqrt(running_var + eps)
            r = jnp.clip(std / running_std, 1.0 / rmax, rmax)
            d = jnp.clip((batch_mean - running_mean) / running_std, -dmax, dmax)
        else:  # "norm"
            r = jnp.ones_like(std)
            d = jnp.zeros_like(std)
        g = jnp.ones_like(std) if gamma is None else gamma
        scale = g * r / std
        shift = g * (d - batch_mean * r / std) + beta

        if momentum_basic_batchsize is not None:
            momentum = momentum * math.sqrt(x.shape[0] / momentum_basic_batchsize)
        new_mean = running_mean + momentum * (batch_mean - running_mean)
        new_var = running_var + momentum * (batch_var - running_var)
    else:
        inv_std = 1.0 / jnp.sqrt(running_var + eps)
        g = jnp.ones_like(inv_std) if gamma is None else gamma
        scale = g * inv_std
        shift = beta - running_mean * scale
        new_mean, new_var = running_mean, running_var

    y = _bn_apply(x, mask, scale, shift)
    return y, new_mean, new_var


# ---------------------------------------------------------------------------
# pure-JAX reference (direct transcription of the PyTorch forward)
# ---------------------------------------------------------------------------
def batchnorm2d_reference(x, mask, running_mean, running_var, beta, gamma=None, *,
                          eps=1e-5, momentum=0.01, training=False, mode="renorm",
                          rmax=1.0, dmax=0.0):
    C = x.shape[1]
    per_c = lambda v: v.reshape(1, C, 1, 1)
    if training and mode != "fixup":
        mask_sum = jnp.sum(mask)
        batch_mean = jnp.sum(x, axis=(0, 2, 3)) / mask_sum
        zm = x - per_c(batch_mean)
        batch_var = jnp.sum(jnp.square(zm * mask), axis=(0, 2, 3)) / mask_sum
        std = jnp.sqrt(batch_var + eps)
        if mode == "renorm":
            running_std = jnp.sqrt(running_var + eps)
            r = jnp.clip(std / running_std, 1.0 / rmax, rmax)
            d = jnp.clip((batch_mean - running_mean) / running_std, -dmax, dmax)
            xn = (x - per_c(batch_mean)) / per_c(std) * per_c(r) + per_c(d)
        else:
            xn = (x - per_c(batch_mean)) / per_c(std)
        momentum = min(max(momentum, 0.0), 1.0)
        new_mean = running_mean + momentum * (batch_mean - running_mean)
        new_var = running_var + momentum * (batch_var - running_var)
    else:
        xn = (x - per_c(running_mean)) / per_c(jnp.sqrt(running_var + eps))
        new_mean, new_var = running_mean, running_var
    if gamma is not None:
        xn = xn * per_c(gamma)
    xn = xn + per_c(beta)
    return xn * mask, new_mean, new_var


if __name__ == "__main__":
    B, C, H, W = 2, 4, 16, 16
    key = jax.random.PRNGKey(0)
    kx, km, krm, krv, kb = jax.random.split(key, 5)

    x = jax.random.normal(kx, (B, C, H, W), dtype=jnp.float32)
    mask = (jax.random.uniform(km, (B, 1, H, W)) > 0.2).astype(jnp.float32)
    running_mean = 0.1 * jax.random.normal(krm, (C,), dtype=jnp.float32)
    running_var = 1.0 + 0.2 * jax.random.uniform(krv, (C,), dtype=jnp.float32)
    beta = 0.1 * jax.random.normal(kb, (C,), dtype=jnp.float32)
    gamma = None  # use_gamma=False (module default)

    # eval-mode forward (running statistics)
    y_eval, _, _ = batchnorm2d_forward(
        x, mask, running_mean, running_var, beta, gamma, training=False)
    jax.block_until_ready(y_eval)
    y_eval_ref, _, _ = batchnorm2d_reference(
        x, mask, running_mean, running_var, beta, gamma, training=False)
    assert y_eval.shape == (B, C, H, W)
    assert jnp.allclose(y_eval, y_eval_ref, atol=1e-5, rtol=1e-5)

    # training-mode forward (masked batch stats + renorm + running-stat update)
    y_tr, new_mean, new_var = batchnorm2d_forward(
        x, mask, running_mean, running_var, beta, gamma,
        training=True, mode="renorm", rmax=1.0, dmax=0.0, momentum=0.01)
    jax.block_until_ready(y_tr)
    y_tr_ref, new_mean_ref, new_var_ref = batchnorm2d_reference(
        x, mask, running_mean, running_var, beta, gamma,
        training=True, mode="renorm", rmax=1.0, dmax=0.0, momentum=0.01)
    assert jnp.allclose(y_tr, y_tr_ref, atol=1e-4, rtol=1e-4)
    assert jnp.allclose(new_mean, new_mean_ref, atol=1e-5, rtol=1e-5)
    assert jnp.allclose(new_var, new_var_ref, atol=1e-5, rtol=1e-5)

    print("KERNEL_OK")
</pallas_src>

<mosaic_0001>
module attributes {stable_mosaic.version = 11 : i64} {
  func.func @_bn_apply_kernel(%arg0: i32, %arg1: i32, %arg2: i32, %arg3: memref<1x4x256xf32, #tpu.memory_space<vmem>>, %arg4: memref<1x1x256xf32, #tpu.memory_space<vmem>>, %arg5: memref<4x1xf32, #tpu.memory_space<vmem>>, %arg6: memref<4x1xf32, #tpu.memory_space<vmem>>, %arg7: memref<1x4x256xf32, #tpu.memory_space<vmem>>) attributes {dimension_semantics = [#tpu.dimension_semantics<parallel>, #tpu.dimension_semantics<parallel>, #tpu.dimension_semantics<parallel>], iteration_bounds = array<i64: 2, 1, 1>, scalar_prefetch = 0 : i64, scratch_operands = 0 : i64, tpu.core_type = #tpu.core_type<tc>, window_params = [{transform_indices = @transform_0, window_bounds = array<i64: 1, 4, 256>}, {transform_indices = @transform_1, window_bounds = array<i64: 1, 1, 256>}, {transform_indices = @transform_2, window_bounds = array<i64: 4, 1>}, {transform_indices = @transform_3, window_bounds = array<i64: 4, 1>}, {transform_indices = @transform_4, window_bounds = array<i64: 1, 4, 256>}]} {
    %c0 = arith.constant 0 : index
    %c0_0 = arith.constant 0 : index
    %c0_1 = arith.constant 0 : index
    %0 = vector.load %arg3[%c0, %c0_0, %c0_1] : memref<1x4x256xf32, #tpu.memory_space<vmem>>, vector<1x4x256xf32>
    %1 = vector.shape_cast %0 : vector<1x4x256xf32> to vector<4x256xf32>
    %c0_2 = arith.constant 0 : index
    %c0_3 = arith.constant 0 : index
    %c0_4 = arith.constant 0 : index
    %2 = vector.load %arg4[%c0_2, %c0_3, %c0_4] : memref<1x1x256xf32, #tpu.memory_space<vmem>>, vector<1x1x256xf32>
    %3 = vector.shape_cast %2 : vector<1x1x256xf32> to vector<1x256xf32>
    %c0_5 = arith.constant 0 : index
    %c0_6 = arith.constant 0 : index
    %4 = vector.load %arg5[%c0_5, %c0_6] : memref<4x1xf32, #tpu.memory_space<vmem>>, vector<4x1xf32>
    %5 = vector.broadcast %4 : vector<4x1xf32> to vector<4x256xf32>
    %6 = arith.mulf %1, %5 : vector<4x256xf32>
    %c0_7 = arith.constant 0 : index
    %c0_8 = arith.constant 0 : index
    %7 = vector.load %arg6[%c0_7, %c0_8] : memref<4x1xf32, #tpu.memory_space<vmem>>, vector<4x1xf32>
    %8 = vector.broadcast %7 : vector<4x1xf32> to vector<4x256xf32>
    %9 = arith.addf %6, %8 : vector<4x256xf32>
    %10 = vector.broadcast %3 : vector<1x256xf32> to vector<4x256xf32>
    %11 = arith.mulf %9, %10 : vector<4x256xf32>
    %c0_9 = arith.constant 0 : index
    %c0_10 = arith.constant 0 : index
    %c0_11 = arith.constant 0 : index
    %12 = vector.load %arg7[%c0_9, %c0_10, %c0_11] : memref<1x4x256xf32, #tpu.memory_space<vmem>>, vector<1x4x256xf32>
    %13 = vector.shape_cast %12 : vector<1x4x256xf32> to vector<4x256xf32>
    %14 = vector.shape_cast %11 : vector<4x256xf32> to vector<1x4x256xf32>
    tpu.vector_store %arg7[%c0_9, %c0_10, %c0_11], %14 {strides = array<i32>} : memref<1x4x256xf32, #tpu.memory_space<vmem>>, vector<1x4x256xf32>,
    return
  }
  func.func @transform_0(%arg0: i32, %arg1: i32, %arg2: i32) -> (i32, i32, i32) {
    %c0_i32 = arith.constant 0 : i32
    return %arg0, %arg1, %arg2 : i32, i32, i32
  }
  func.func @transform_1(%arg0: i32, %arg1: i32, %arg2: i32) -> (i32, i32, i32) {
    %c0_i32 = arith.constant 0 : i32
    %c0_i32_0 = arith.constant 0 : i32
    return %arg0, %c0_i32, %arg2 : i32, i32, i32
  }
  func.func @transform_2(%arg0: i32, %arg1: i32, %arg2: i32) -> (i32, i32) {
    %c0_i32 = arith.constant 0 : i32
    %c0_i32_0 = arith.constant 0 : i32
    return %arg1, %c0_i32 : i32, i32
  }
  func.func @transform_3(%arg0: i32, %arg1: i32, %arg2: i32) -> (i32, i32) {
    %c0_i32 = arith.constant 0 : i32
    %c0_i32_0 = arith.constant 0 : i32
    return %arg1, %c0_i32 : i32, i32
  }
  func.func @transform_4(%arg0: i32, %arg1: i32, %arg2: i32) -> (i32, i32, i32) {
    %c0_i32 = arith.constant 0 : i32
    return %arg0, %arg1, %arg2 : i32, i32, i32
  }
}

</mosaic_0001>

<bundles_post_ra>
// kernel: tpu_custom_call.1
= control target key start
LH: loop header
LB: loop body
LE: loop exit
PB: predicated region body
PF: predicated region fallthrough
CT: control target
= control target key end

     0   :  { %9 = vsyncpa [#allocation3], 0  ;;  %s867_s0 = inlined_call_operand.hbm [shape: f32[2,4,256], index: 0, kind: input, shape index: {}]   ;;  %s868_s1 = inlined_call_operand.vmem [shape: f32[2,1,256], index: 1, kind: input, shape index: {}]   ;;  %s869_s2 = inlined_call_operand.vmem [shape: f32[4,1], index: 2, kind: input, shape index: {}]   ;;  %s870_s3 = inlined_call_operand.vmem [shape: f32[4,1], index: 3, kind: input, shape index: {}]   ;;  %s871_s4 = inlined_call_operand.hbm [shape: f32[2,4,256], index: 4, kind: output, shape index: {}]  }
   0x1   :  { %11 = vsyncpa [#allocation3 + $0x1], 0 }
   0x2   :  { %12 = vsyncpa [#allocation4], 0 }
   0x3   :  { %14 = vsyncpa [#allocation4 + $0x1], 0  ;;  %s732_s15 = smov 0   ;;  %s734_s16 = smov 0  }
   0x4   :  { %s736_s17 = smov 0   ;;  %s738_s18 = smov 0  }
   0x5   :  { %s740_s19 = smov 0   ;;  %s742_s20 = smov 0  }
   0x6 LB: > { %s506_s21 = sadd.s32 4294967295, %s703_s20   ;;  %s507_s22 = sadd.s32 4294967294, %s703_s20   ;;  %s703_s20 = sphi %s742_s20, %s20_s20   ;;  %s699_s19 = sphi %s740_s19, %s880_s19   ;;  %s695_s18 = sphi %s738_s18, %s879_s18   ;;  %s691_s17 = sphi %s736_s17, %s878_s17   ;;  %s687_s16 = sphi %s734_s16, %s877_s16   ;;  %s683_s15 = sphi %s732_s15, %s876_s15  }
   0x7   : > { %s39_s23 = sadd.s32 1, %s699_s19  ;;  %s50_s24 = sadd.s32 1, %s691_s17 }
   0x8   : > { %p41_p0 = scmp.ge.s32.totalorder %s39_s23, 2  ;;  %p57_p1 = scmp.ne.s32.totalorder %s691_s17, %s687_s16 }
   0x9   : > { %p58_p2 = scmp.eq.s32.totalorder %s703_s20, 0  ;;  %p63_p3 = scmp.ne.s32.totalorder %s687_s16, %s683_s15 }
   0xa   : > { %s882_s23 = smov (%p41_p0, %s39_s23), 0  ;;  %p64_p5 = scmp.eq.s32.totalorder %s506_s21, 0 }
   0xb   : > { %p773_p4 = por %p58_p2, %p57_p1  ;;  %s43_s26 = ssub.s32 %s699_s19, %s882_s23 }
   0xc   : > { %p171_p6 = scmp.eq.s32.totalorder %s506_s21, 1  ;;  %p48_p7 = scmp.eq.s32.totalorder %s43_s26, 0 }
   0xd   : > { %p779_p8 = por %p64_p5, %p63_p3  ;;  %p177_p10 = scmp.eq.s32.totalorder %s507_s22, 1 }
   0xe   : > { %p783_p9 = por %p171_p6, %p57_p1  ;;  %p511_p12 = scmp.ge.s32.totalorder %s703_s20, 2 }
   0xf   : > { %s788_s29 = scalar_select %p48_p7, %s691_s17, %s50_s24  }
  0x10   : > { %p790_p11 = por %p177_p10, %p63_p3  ;;  %p538_p13 = scmp.lt.s32.totalorder %s703_s20, 2 }
  0x11   : > { %s211_s5 = sand.u32 1, %s691_s17   ;;  %s524_s7 = sshll.u32 %s699_s19, 3 }
  0x12   : > { %s512_s6 = sshll.u32 %s211_s5, 3  ;;  %s224_s10 = scalar_lea.hbm %s867_s0, %s524_s7 }
  0x13   : > { %s215_s11 = scalar_lea.vmem [#allocation2], %s512_s6  ;;  %s226_s13 = sshll.u32 %s224_s10, 4  ;;  %s227_s13 = int_to_ptr.hbm [resolvable:$true] %s226_s13 }
  0x14   : > { %s228_s12 = sshll.u32 %s215_s11, 4  ;;  %p531_p0 = pnand %p538_p13, %p773_p4  ;;  %s229_s12 = int_to_ptr.vmem [resolvable:$true] %s228_s12 }
  0x15   : > { %p515_p1 = scmp.ge.s32.totalorder %s703_s20, 1  ;;  %p245_p2 = scmp.lt.s32.totalorder %s703_s20, 3 }
  0x16   : > { %s212_s14 = scalar_lea.sflag [#allocation3], %s211_s5 }
  0x17   : > { %533 = dma.hbm_to_vmem [thread:$0]  (!%p531_p0), %s227_s13, 128, %s229_s12, %s212_s14  }
  0x18   : > { %p246_p3 = pnand %p515_p1, %p245_p2 }
  0x19   : > { %s806_s21 = sand.u32 (!%p246_p3), 1, %s687_s16  }
  0x1a   : > { %249 = sbr.rel (%p246_p3) target bundleno = 166 (0xa6), region = 36  ;;  %s516_s22 = sshll.u32 (!%p246_p3), %s806_s21, 3 }
  0x1b   : > { %s252_s24 = scalar_lea.sflag (!%p246_p3), [#allocation3], %s806_s21  ;;  %s255_s26 = scalar_lea.vmem (!%p246_p3), [#allocation2], %s516_s22 }
  0x1f   : > { %674 = dma.done.wait (%p779_p8), %s252_s24, 128  }
  0x20   : > { %676 = vsyncadd (%p779_p8), %s252_s24, 4294967168  ;;  %v705_v0 = vmov 0   ;;  %v318_v1 = vld [vmem:[%s869_s2] sm:$0xf]  ;;  %p299_p4 = scmp.lt.s32.totalorder %s695_s18, 1  ;;  %s525_s12 = sshll.u32 %s695_s18, 3 }
  0x21   : > { %590 = vset.pattern.permute.xlu0 %v705_v0  ;;  %v329_v2 = vld [vmem:[%s870_s3] sm:$0xf]  ;;  %v706_v3 = vmov 839922192   ;;  %vm344_vm0 = vcmask 1043456   ;;  %s365_s24 = scalar_lea.hbm %s871_s4, %s525_s12  ;;  %s296_s25 = scalar_lea.vmem [#allocation5], %s516_s22 }
  0x22   : > { %321 = vperm.xlu0 %590, %v318_v1   ;;  %s300_s8 = scalar_select %p299_p4, %s695_s18, 1  ;;  %v324_v4 = vunpack.c.l.s4 %v706_v3  ;;  %v316_v10 = vld [vmem:[%s255_s26] sm:$0xff] }
  0x23   : > { %s367_s5 = sshll.u32 %s296_s25, 4  ;;  %s369_s6 = sshll.u32 %s365_s24, 4  ;;  %s368_s5 = int_to_ptr.vmem [resolvable:$true] %s367_s5  ;;  %s370_s6 = int_to_ptr.hbm [resolvable:$true] %s369_s6 }
  0x24   : > { %s518_s9 = sshll.u32 %s300_s8, 1  ;;  %v325_v7 = vunpack.c.0.s8 %v324_v4  ;;  %s350_s18 = scalar_lea.sflag [#allocation4], %s806_s21 }
  0x25   : > { %s305_s11 = scalar_lea.vmem %s868_s1, %s518_s9  ;;  %s635_s26 = sshra.s32 %s370_s6, 4  ;;  %s636_s26 = int_to_ptr.hbm [resolvable:$true] %s635_s26 }
  0x26   : > { %v317_v5 = vld [vmem:[%s305_s11] sm:$0x3]  ;;  %s637_s7 = scalar_lea.hbm %s636_s26, 8  ;;  %s641_s27 = scalar_lea.hbm %s871_s4, 16 }
  0x27   : > { %v342_v8 = vperm.slane %v317_v5, 1  ;;  %v341_v11 = vperm.slane %v317_v5, 0  ;;  %p638_p5 = scmp.ne.s32.totalorder %s636_s26, %s637_s7  ;;  %p642_p8 = scmp.lt.s32.totalorder %s636_s26, %s871_s4 }
  0x28   : > { %p643_p10 = scmp.lt.s32.totalorder %s641_s27, %s637_s7 }
  0x29   : > { %v343_v12 = vrot.slane %v342_v8, 4  ;;  %p639_p6 = pnand %p638_p5, %p783_p9 }
  0x2a   : > { %332 = vperm.xlu0 %590, %v329_v2   ;;  %p644_p13 = por %p643_p10, %p642_p8 }
  0x2b   : > { %v345_v16 = vsel %vm344_vm0, %v341_v11, %v343_v12  ;;  %p640_p7 = pneg %p639_p6 }
  0x2d   : > { %p645_p0 = pnand %p644_p13, %p640_p7 }
  0x94   : > { %v322_v6 = vpop.permute.xlu0 %321 }
  0x95   : > { %v326_v9 = vperm.slane %v322_v6, %v325_v7 }
  0x97   : > { %v328_v14 = vmul.f32 %v326_v9, %v316_v10 }
  0x9c   : > { %v333_v13 = vpop.permute.xlu0 %332 }
  0x9d   : > { %v337_v15 = vperm.slane %v333_v13, %v325_v7 }
  0x9f   : > { %v339_v17 = vadd.f32 %v337_v15, %v328_v14 }
  0xa1   : > { %v347_v18 = vmul.f32 %v345_v16, %v339_v17 }
  0xa3   : > { %348 = vst [vmem:[%s296_s25] sm:$0xff] %v347_v18 }
  0xa4   : > { %648 = shalt.err (!%p645_p0)
}
  0xa5   : > { %528 = dma.vmem_to_hbm [thread:$0]  (%p783_p9), %s368_s5, 128, %s370_s6, %s350_s18  }
  0xa6 PF: > { %s381_s21 = sand.u32 1, %s683_s15   ;;  %p535_p1 = pnand %p511_p12, %p790_p11 }
  0xa7   : > { %s382_s11 = scalar_lea.sflag [#allocation4], %s381_s21 }
  0xa8   : > { %p536_p2 = pneg %p535_p1 }
  0xaa   : > { %678 = dma.done.wait (%p536_p2), %s382_s11, 128  }
  0xab   : > { %680 = vsyncadd (%p536_p2), %s382_s11, 4294967168  ;;  %s20_s20 = sadd.s32 1, %s703_s20   ;;  %s876_s15 = smov %s687_s16 }
  0xac   : > { %p17_p3 = scmp.ge.s32.totalorder %s20_s20, 4   ;;  %s877_s16 = smov %s691_s17 }
  0xad   : > { %s878_s17 = smov %s788_s29  ;;  %s879_s18 = smov %s699_s19 }
  0xae   : > { %s880_s19 = smov %s882_s23  ;;  %19 = sbr.rel (!%p17_p3) target bundleno = 6 (0x6), region = 90 }
  0xb3   :  { %388 = vsyncpa [#allocation3], 1 }
  0xb4   :  { %390 = vsyncpa [#allocation3 + $0x1], 1 }
  0xb5   :  { %391 = vsyncpa [#allocation4], 1 }
  0xb6   :  { %393 = vsyncpa [#allocation4 + $0x1], 1 }

</bundles_post_ra>
